<compile_context>
chip_gen: v7x
topology: tpu7x:2x2x1
jax: 0.10.0
libtpu: 0.0.40
codegen_flags: <defaults>
</compile_context>

<pallas_src>
import functools

import jax
import jax.numpy as jnp
from jax.experimental import pallas as pl
from jax.experimental.pallas import tpu as pltpu

WIDTHS = (3, 4, 5)        # CNNTextLayer widths
KMAX = max(WIDTHS)
LANE = 128
NEG_INF = -1e30           # keep f32: would overflow bf16 to -inf


def _round_up(x, m):
    return (x + m - 1) // m * m


# ----------------------------- Pallas kernel --------------------------------

def word_cnn_kernel(x_ref,      # (TB, Lp, Kp) bf16  im2col activations
                    w_ref,      # (Kp, Np)     bf16  fused conv-tap bank
                    mb_ref,     # (Lp, Np)     f32   bias (valid t) / -1e30 (masked)
                    wo_ref,     # (Np, NLp)    bf16  output projection
                    bo_ref,     # (1, NLp)     f32
                    out_ref):   # (TB, NLp)    f32
    TB, Lp, Kp = x_ref.shape
    Np = w_ref.shape[1]

    # All three conv widths in ONE lane-dense matmul: M = TB*Lp, K = Kp, N = Np.
    x = x_ref[...].reshape(TB * Lp, Kp)                               # bf16
    acc = jnp.dot(x, w_ref[...], preferred_element_type=jnp.float32)  # (M, Np) f32

    # Bias + time-validity mask in one broadcast add; ReLU clamps masked slots
    # to 0, which cannot win the max since valid post-ReLU values are >= 0.
    act = jnp.maximum(acc.reshape(TB, Lp, Np) + mb_ref[...], 0.0)
    feat = jnp.max(act, axis=1)                                       # (TB, Np)

    logits = jnp.dot(feat.astype(jnp.bfloat16), wo_ref[...],
                     preferred_element_type=jnp.float32) + bo_ref[...]
    out_ref[...] = logits.astype(out_ref.dtype)


# --------------------------- Parameter packing -------------------------------

def pack_word_cnn_params(emb_table, conv_ws, conv_bs, w_out, b_out, max_seq_length):
    """Pack/pad the (constant) model parameters once, outside the hot path.

    emb_table: (V, D) f32.  conv_ws[i]: (w_i, D, Co) f32.  conv_bs[i]: (Co,).
    w_out: (3*Co, num_labels) f32.  b_out: (num_labels,) f32.
    `max_seq_length` must equal the seq length of the ids passed to forward().
    """
    V, D = emb_table.shape
    Co = conv_bs[0].shape[0]
    num_labels = w_out.shape[1]
    L = max_seq_length
    assert L >= KMAX, "sequence shorter than the largest conv width"

    Kp = _round_up(KMAX * D, LANE)                 # fused-tap K, lane padded
    Np = _round_up(len(WIDTHS) * Co, LANE)
    NLp = _round_up(num_labels, LANE)
    Lp = _round_up(L, 16)                          # bf16 packs 16 sublanes/vreg; keeps the
                                                   # in-kernel (TB,Lp,Kp)->(TB*Lp,Kp) reshape free

    # Embedding table with a trailing all-zero row, used for (a) batch/time
    # padding and (b) conv-window overhang past position L-1.  Overhang
    # positions are additionally masked (mask_bias) before the max-pool, so the
    # zero row never influences valid outputs.
    table_p = jnp.concatenate([emb_table, jnp.zeros((1, D), emb_table.dtype)], axis=0)
    table_p = table_p.astype(jnp.bfloat16)

    # Fused tap bank: K = KMAX taps x D features (zero rows for taps >= width),
    # and a combined bias+mask slab (padded output lanes stay fully masked so
    # their features are exactly 0 regardless of w_out padding).
    w_fused = jnp.zeros((Kp, Np), jnp.float32)
    mask_bias = jnp.full((Lp, Np), NEG_INF, jnp.float32)
    t = jnp.arange(Lp)
    for i, (Wc, bc) in enumerate(zip(conv_ws, conv_bs)):
        w_len = Wc.shape[0]
        c0 = i * Co
        for k in range(w_len):
            w_fused = w_fused.at[k * D:(k + 1) * D, c0:c0 + Co].set(Wc[k])
        valid = (t <= L - w_len)[:, None]          # valid conv positions for this width
        mask_bias = mask_bias.at[:, c0:c0 + Co].set(
            jnp.where(valid, bc[None, :], NEG_INF))
    w_fused = w_fused.astype(jnp.bfloat16)

    w_out_p = jnp.zeros((Np, NLp), jnp.float32)
    w_out_p = w_out_p.at[:len(WIDTHS) * Co, :num_labels].set(w_out).astype(jnp.bfloat16)
    b_out_p = jnp.zeros((1, NLp), jnp.float32).at[0, :num_labels].set(b_out)

    return {"table_p": table_p, "w_fused": w_fused, "mask_bias": mask_bias,
            "w_out": w_out_p, "b_out": b_out_p}


# ------------------------------ Forward wrapper -------------------------------

def _derive_batch_tile(B, Lp, Kp, Np, vmem_budget_bytes=24 << 20):
    """Pick TB so the double-buffered emb tile plus the compiler-managed f32
    intermediates fit a v7x-safe VMEM budget (64 MiB physical on v7x; leave
    headroom for resident weights and scratch)."""
    per_row = Lp * (2 * Kp * 2 + 3 * Np * 4)       # 2x bf16 emb buffers + ~3 f32 slabs
    tb = vmem_budget_bytes // max(per_row, 1)
    tb = max(8, min(128, (tb // 8) * 8))
    return int(tb)


def word_cnn_forward(ids, params, *, num_labels, batch_tile=None):
    """ids: (B, L) int token ids (L == max_seq_length used at pack time)."""
    table_p = params["table_p"]        # (V+1, D) bf16, last row = 0
    w_fused = params["w_fused"]        # (Kp, Np) bf16
    mask_bias = params["mask_bias"]    # (Lp, Np) f32
    w_out_p = params["w_out"]          # (Np, NLp) bf16
    b_out_p = params["b_out"]          # (1, NLp) f32

    B, L = ids.shape
    D = table_p.shape[1]
    zero_id = table_p.shape[0] - 1
    Kp, Np = w_fused.shape
    Lp = mask_bias.shape[0]
    NLp = w_out_p.shape[1]
    assert L >= KMAX and Lp >= L

    TB = batch_tile if batch_tile is not None else _derive_batch_tile(B, Lp, Kp, Np)
    TB = max(8, min(TB, _round_up(B, 8)))
    Bp = _round_up(B, TB)
    # For large B prefer TB such that the grid length is even, so the
    # "parallel" batch axis load-balances across v7x's two TensorCores.

    # ---- im2col via shifted-id gather: ONE pass writes the kernel layout ----
    # x[b, t, k*D:(k+1)*D] = emb[b, t+k]  (zero row when t+k >= L or b >= B).
    n_slots = Kp // D if Kp % D == 0 else KMAX
    ids_p = jnp.full((Bp, Lp), zero_id, jnp.int32).at[:B, :L].set(ids.astype(jnp.int32))
    taps = []
    for k in range(n_slots):
        if k < KMAX:
            col = jnp.full((Bp, Lp), zero_id, jnp.int32).at[:, :Lp - k].set(ids_p[:, k:])
        else:
            col = jnp.full((Bp, Lp), zero_id, jnp.int32)   # phantom tap = lane padding
        taps.append(col)
    ids2 = jnp.stack(taps, axis=-1)                                    # (Bp, Lp, n_slots)
    x = jnp.take(table_p, ids2, axis=0).reshape(Bp, Lp, n_slots * D)   # bf16
    if n_slots * D < Kp:                                               # only if D doesn't divide Kp
        x = jnp.pad(x, ((0, 0), (0, 0), (0, Kp - n_slots * D)))

    # VMEM estimate: double-buffered blocks + resident weights + f32 intermediates.
    vmem_need = (2 * (TB * Lp * Kp * 2 + TB * NLp * 4)
                 + 2 * (Kp * Np * 2 + Lp * Np * 4 + Np * NLp * 2 + NLp * 4)
                 + 3 * TB * Lp * Np * 4 + TB * Lp * Kp * 2 + (4 << 20))
    vmem_limit = int(min(max(vmem_need, 16 << 20), 40 << 20))

    out = pl.pallas_call(
        word_cnn_kernel,
        out_shape=jax.ShapeDtypeStruct((Bp, NLp), jnp.float32),
        grid_spec=pltpu.PrefetchScalarGridSpec(
            num_scalar_prefetch=0,
            grid=(Bp // TB,),
            in_specs=[
                pl.BlockSpec((TB, Lp, Kp), lambda i: (i, 0, 0)),   # im2col activations
                pl.BlockSpec((Kp, Np), lambda i: (0, 0)),          # fused tap bank (resident)
                pl.BlockSpec((Lp, Np), lambda i: (0, 0)),          # bias + time mask (resident)
                pl.BlockSpec((Np, NLp), lambda i: (0, 0)),         # out-proj weight (resident)
                pl.BlockSpec((1, NLp), lambda i: (0, 0)),          # out-proj bias (resident)
            ],
            out_specs=pl.BlockSpec((TB, NLp), lambda i: (i, 0)),
        ),
        compiler_params=pltpu.CompilerParams(
            dimension_semantics=("parallel",),
            vmem_limit_bytes=vmem_limit,
        ),
    )(x, w_fused, mask_bias, w_out_p, b_out_p)

    return out[:B, :num_labels]


# --------------------------- Pure-JAX reference ------------------------------

def ref_forward(emb, conv_ws, conv_bs, w_out, b_out):
    """Reference on (already bf16-rounded) operands, exact f32 arithmetic."""
    B, L, D = emb.shape
    hi = jax.lax.Precision.HIGHEST
    feats = []
    for W, b in zip(conv_ws, conv_bs):
        w_len = W.shape[0]
        T = L - w_len + 1
        y = sum(jnp.einsum("btd,dc->btc", emb[:, k:k + T, :], W[k], precision=hi)
                for k in range(w_len))
        y = jnp.maximum(y + b, 0.0)
        feats.append(y.max(axis=1))
    feat = jnp.concatenate(feats, axis=1)
    feat = feat.astype(jnp.bfloat16).astype(jnp.float32)   # match kernel's bf16 feed
    return jnp.dot(feat, w_out, precision=hi) + b_out


# ------------------------------- Main ----------------------------------------

if __name__ == "__main__":
    # Small deterministic config consistent with the module
    # (hidden_size=Co, widths=[3,4,5], d_out=3*Co, num_labels=2). Dropout is
    # identity at inference.
    B, L = 64, 16          # batch, max_seq_length (small; grid of 2 batch tiles)
    V, D = 50, 32          # vocab size, embedding dim (small)
    Co = 32                # hidden_size (filters per width)
    NUM_LABELS = 2

    key = jax.random.PRNGKey(0)
    k_emb, k_ids, k_w, k_b, k_wo, k_bo = jax.random.split(key, 6)

    emb_table = jax.random.normal(k_emb, (V, D), jnp.float32) * 0.1
    wkeys = jax.random.split(k_w, len(WIDTHS))
    bkeys = jax.random.split(k_b, len(WIDTHS))
    conv_ws = [jax.random.normal(wk, (w, D, Co), jnp.float32) * 0.05
               for wk, w in zip(wkeys, WIDTHS)]
    conv_bs = [jax.random.normal(bk, (Co,), jnp.float32) * 0.05 for bk in bkeys]
    w_out = jax.random.normal(k_wo, (3 * Co, NUM_LABELS), jnp.float32) * 0.05
    b_out = jax.random.normal(k_bo, (NUM_LABELS,), jnp.float32) * 0.05

    ids = jax.random.randint(k_ids, (B, L), 0, V)

    # Pack the constant parameters once; jit the per-call forward.
    params = pack_word_cnn_params(emb_table, conv_ws, conv_bs, w_out, b_out,
                                  max_seq_length=L)
    fwd = jax.jit(functools.partial(word_cnn_forward,
                                    num_labels=NUM_LABELS, batch_tile=32))

    logits = jax.block_until_ready(fwd(ids, params))

    # Reference computed on the same bf16-rounded operands the kernel consumes.
    table_r = emb_table.astype(jnp.bfloat16).astype(jnp.float32)
    emb_r = jnp.take(table_r, ids, axis=0)                 # (B, L, D)
    conv_ws_r = [w.astype(jnp.bfloat16).astype(jnp.float32) for w in conv_ws]
    w_out_r = w_out.astype(jnp.bfloat16).astype(jnp.float32)
    ref = ref_forward(emb_r, conv_ws_r, conv_bs, w_out_r, b_out)

    assert logits.shape == (B, NUM_LABELS)
    max_err = float(jnp.max(jnp.abs(logits - ref)))
    assert jnp.allclose(logits, ref, atol=2e-3, rtol=2e-3), (max_err, logits, ref)

    print("KERNEL_OK")
</pallas_src>

<mosaic_0001>
module attributes {stable_mosaic.version = 11 : i64} {
  func.func @word_cnn_kernel(%arg0: i32, %arg1: memref<32x16x256xbf16, #tpu.memory_space<vmem>>, %arg2: memref<256x128xbf16, #tpu.memory_space<vmem>>, %arg3: memref<16x128xf32, #tpu.memory_space<vmem>>, %arg4: memref<128x128xbf16, #tpu.memory_space<vmem>>, %arg5: memref<1x128xf32, #tpu.memory_space<vmem>>, %arg6: memref<32x128xf32, #tpu.memory_space<vmem>>) attributes {dimension_semantics = [#tpu.dimension_semantics<parallel>], iteration_bounds = array<i64: 2>, scalar_prefetch = 0 : i64, scratch_operands = 0 : i64, tpu.core_type = #tpu.core_type<tc>, window_params = [{transform_indices = @transform_0, window_bounds = array<i64: 32, 16, 256>}, {pipeline_mode = #tpu.pipeline_mode<synchronous>, transform_indices = @transform_1, window_bounds = array<i64: 256, 128>}, {pipeline_mode = #tpu.pipeline_mode<synchronous>, transform_indices = @transform_2, window_bounds = array<i64: 16, 128>}, {pipeline_mode = #tpu.pipeline_mode<synchronous>, transform_indices = @transform_3, window_bounds = array<i64: 128, 128>}, {pipeline_mode = #tpu.pipeline_mode<synchronous>, transform_indices = @transform_4, window_bounds = array<i64: 1, 128>}, {transform_indices = @transform_5, window_bounds = array<i64: 32, 128>}]} {
    %c0 = arith.constant 0 : index
    %c0_0 = arith.constant 0 : index
    %c0_1 = arith.constant 0 : index
    %0 = vector.load %arg1[%c0, %c0_0, %c0_1] : memref<32x16x256xbf16, #tpu.memory_space<vmem>>, vector<32x16x256xbf16>
    %1 = vector.shape_cast %0 : vector<32x16x256xbf16> to vector<512x256xbf16>
    %c0_2 = arith.constant 0 : index
    %c0_3 = arith.constant 0 : index
    %2 = vector.load %arg2[%c0_2, %c0_3] : memref<256x128xbf16, #tpu.memory_space<vmem>>, vector<256x128xbf16>
    %cst = arith.constant dense<0.000000e+00> : vector<512x128xf32>
    %3 = tpu.matmul %1, %2, %cst {dimension_numbers = #tpu.dot_dimension_numbers<[1], [0], [0], [1], [0, 0, 1, 1], [], []>} : vector<512x256xbf16>, vector<256x128xbf16>, vector<512x128xf32> -> vector<512x128xf32>
    %4 = vector.shape_cast %3 : vector<512x128xf32> to vector<32x16x128xf32>
    %c0_4 = arith.constant 0 : index
    %c0_5 = arith.constant 0 : index
    %5 = vector.load %arg3[%c0_4, %c0_5] : memref<16x128xf32, #tpu.memory_space<vmem>>, vector<16x128xf32>
    %6 = vector.shape_cast %5 : vector<16x128xf32> to vector<1x16x128xf32>
    %7 = vector.broadcast %6 : vector<1x16x128xf32> to vector<32x16x128xf32>
    %8 = arith.addf %4, %7 : vector<32x16x128xf32>
    %cst_6 = arith.constant 0.000000e+00 : f32
    %9 = vector.broadcast %cst_6 : f32 to vector<32x16x128xf32>
    %10 = arith.maximumf %8, %9 : vector<32x16x128xf32>
    %cst_7 = arith.constant dense<0xFF800000> : vector<32x128xf32>
    %11 = vector.multi_reduction <maximumf>, %10, %cst_7 [1] : vector<32x16x128xf32> to vector<32x128xf32>
    %12 = arith.truncf %11 : vector<32x128xf32> to vector<32x128xbf16>
    %c0_8 = arith.constant 0 : index
    %c0_9 = arith.constant 0 : index
    %13 = vector.load %arg4[%c0_8, %c0_9] : memref<128x128xbf16, #tpu.memory_space<vmem>>, vector<128x128xbf16>
    %cst_10 = arith.constant dense<0.000000e+00> : vector<32x128xf32>
    %14 = tpu.matmul %12, %13, %cst_10 {dimension_numbers = #tpu.dot_dimension_numbers<[1], [0], [0], [1], [0, 0, 1, 1], [], []>} : vector<32x128xbf16>, vector<128x128xbf16>, vector<32x128xf32> -> vector<32x128xf32>
    %c0_11 = arith.constant 0 : index
    %c0_12 = arith.constant 0 : index
    %15 = vector.load %arg5[%c0_11, %c0_12] : memref<1x128xf32, #tpu.memory_space<vmem>>, vector<1x128xf32>
    %16 = vector.broadcast %15 : vector<1x128xf32> to vector<32x128xf32>
    %17 = arith.addf %14, %16 : vector<32x128xf32>
    %c0_13 = arith.constant 0 : index
    %c0_14 = arith.constant 0 : index
    %18 = vector.load %arg6[%c0_13, %c0_14] : memref<32x128xf32, #tpu.memory_space<vmem>>, vector<32x128xf32>
    tpu.vector_store %arg6[%c0_13, %c0_14], %17 {strides = array<i32>} : memref<32x128xf32, #tpu.memory_space<vmem>>, vector<32x128xf32>,
    return
  }
  func.func @transform_0(%arg0: i32) -> (i32, i32, i32) {
    %c0_i32 = arith.constant 0 : i32
    %c0_i32_0 = arith.constant 0 : i32
    %c0_i32_1 = arith.constant 0 : i32
    return %arg0, %c0_i32, %c0_i32_0 : i32, i32, i32
  }
  func.func @transform_1(%arg0: i32) -> (i32, i32) {
    %c0_i32 = arith.constant 0 : i32
    %c0_i32_0 = arith.constant 0 : i32
    %c0_i32_1 = arith.constant 0 : i32
    return %c0_i32, %c0_i32_0 : i32, i32
  }
  func.func @transform_2(%arg0: i32) -> (i32, i32) {
    %c0_i32 = arith.constant 0 : i32
    %c0_i32_0 = arith.constant 0 : i32
    %c0_i32_1 = arith.constant 0 : i32
    return %c0_i32, %c0_i32_0 : i32, i32
  }
  func.func @transform_3(%arg0: i32) -> (i32, i32) {
    %c0_i32 = arith.constant 0 : i32
    %c0_i32_0 = arith.constant 0 : i32
    %c0_i32_1 = arith.constant 0 : i32
    return %c0_i32, %c0_i32_0 : i32, i32
  }
  func.func @transform_4(%arg0: i32) -> (i32, i32) {
    %c0_i32 = arith.constant 0 : i32
    %c0_i32_0 = arith.constant 0 : i32
    %c0_i32_1 = arith.constant 0 : i32
    return %c0_i32, %c0_i32_0 : i32, i32
  }
  func.func @transform_5(%arg0: i32) -> (i32, i32) {
    %c0_i32 = arith.constant 0 : i32
    %c0_i32_0 = arith.constant 0 : i32
    return %arg0, %c0_i32 : i32, i32
  }
}

</mosaic_0001>

<bundles_post_ra>
// kernel: word_cnn_forward.1
= control target key start
LH: loop header
LB: loop body
LE: loop exit
PB: predicated region body
PF: predicated region fallthrough
CT: control target
= control target key end

     0   :  { %s2035_s18 = smov 0   ;;  %s2368_s0 = inlined_call_operand.vmem [shape: bf16[64,16,256], index: 0, kind: input, shape index: {}]   ;;  %s2369_s1 = inlined_call_operand.vmem [shape: bf16[256,128], index: 1, kind: input, shape index: {}]   ;;  %s2370_s2 = inlined_call_operand.vmem [shape: f32[16,128], index: 2, kind: input, shape index: {}]   ;;  %s2371_s3 = inlined_call_operand.vmem [shape: bf16[128,128], index: 3, kind: input, shape index: {}]   ;;  %s2372_s4 = inlined_call_operand.vmem [shape: f32[1,128], index: 4, kind: input, shape index: {}]   ;;  %s2373_s5 = inlined_call_operand.vmem [shape: f32[64,128], index: 5, kind: output, shape index: {}]  }
   0x1 LB: > { %s1702_s19 = sadd.s32 4294967295, %s2002_s18   ;;  %p1706_p0 = scmp.ge.s32.totalorder %s2002_s18, 1  ;;  %s2002_s18 = sphi %s2035_s18, %s15_s18  }
   0x2   : > { %p189_p1 = scmp.lt.s32.totalorder %s2002_s18, 3 }
   0x4   : > { %p190_p2 = pnand %p1706_p0, %p189_p1 }
   0x5   : > { %v1875_v0 = vld [vmem:[%s2369_s1] sm:$0xff] (!%p190_p2)   ;;  %v2004_v1 = vmov (!%p190_p2), 0   ;;  %s1707_s22 = sshll.u32 (!%p190_p2), %s1702_s19, 5  ;;  %v1876_v2 = vld [vmem:[%s2369_s1 + $0x8] sm:$0xff] (!%p190_p2)   ;;  %v1877_v3 = vld [vmem:[%s2369_s1 + $0x10] sm:$0xff] (!%p190_p2)   ;;  %vm1506_vm0 = vcmask (!%p190_p2), 1041409  }
   0x6   : > { %193 = sbr.rel (%p190_p2) target bundleno = 661 (0x295), region = 40  ;;  %744 = vmatprep.subr.bf16.mxu0 (!%p190_p2), %v2004_v1  ;;  %1834 = vmatprep.subr.bf16.mxu1 (!%p190_p2), %v2004_v1  ;;  %p219_p3 = scmp.lt.s32.totalorder (!%p190_p2), %s1707_s22, 63  ;;  %v1878_v4 = vld [vmem:[%s2369_s1 + $0x18] sm:$0xff] (!%p190_p2)   ;;  %v1879_v5 = vld [vmem:[%s2369_s1 + $0x20] sm:$0xff] (!%p190_p2)   ;;  %v1880_v7 = vld [vmem:[%s2369_s1 + $0x28] sm:$0xff] (!%p190_p2)   ;;  %vm1508_vm1 = vcmask (!%p190_p2), 1042434  }
   0x7   : > { %745 = vmatpush1.bf16.msra.mxu0 (!%p190_p2), %v1875_v0  ;;  %1850 = vmatpush1.bf16.msra.mxu1 (!%p190_p2), %v1875_v0  ;;  %v1881_v9 = vld [vmem:[%s2369_s1 + $0x30] sm:$0xff] (!%p190_p2)   ;;  %v1882_v10 = vld [vmem:[%s2369_s1 + $0x38] sm:$0xff] (!%p190_p2)   ;;  %v1883_v11 = vld [vmem:[%s2369_s1 + $0x40] sm:$0xff] (!%p190_p2)   ;;  %vm1510_vm2 = vcmask (!%p190_p2), 1043459   ;;  %vm1512_vm3 = vcmask (!%p190_p2), 1044484   ;;  %vm1514_vm4 = vcmask (!%p190_p2), 1045509  }
   0x8   : > { %746 = vmatprep.subr.bf16.mxu0 (!%p190_p2), %v2004_v1  ;;  %1835 = vmatprep.subr.bf16.mxu1 (!%p190_p2), %v2004_v1  ;;  %v1884_v12 = vld [vmem:[%s2369_s1 + $0x48] sm:$0xff] (!%p190_p2)   ;;  %v1885_v13 = vld [vmem:[%s2369_s1 + $0x50] sm:$0xff] (!%p190_p2)   ;;  %v1886_v14 = vld [vmem:[%s2369_s1 + $0x58] sm:$0xff] (!%p190_p2)   ;;  %vm1516_vm5 = vcmask (!%p190_p2), 1046534   ;;  %vm1518_vm6 = vcmask (!%p190_p2), 1047559   ;;  %s1710_s8 = sshll.u32 (!%p190_p2), %s1702_s19, 2 }
   0x9   : > { %v1887_v15 = vld [vmem:[%s2369_s1 + $0x60] sm:$0xff] (!%p190_p2)   ;;  %v1888_v16 = vld [vmem:[%s2369_s1 + $0x68] sm:$0xff] (!%p190_p2)   ;;  %v1889_v17 = vld [vmem:[%s2369_s1 + $0x70] sm:$0xff] (!%p190_p2)   ;;  %p226_p4 = scmp.lt.s32.totalorder (!%p190_p2), %s1710_s8, 7 }
   0xa   : > { %v1890_v18 = vld [vmem:[%s2369_s1 + $0x78] sm:$0xff] (!%p190_p2)  }
   0xb   : > { %747 = vmatpush1.bf16.msra.mxu0 (!%p190_p2), %v1876_v2  ;;  %1851 = vmatpush1.bf16.msra.mxu1 (!%p190_p2), %v1876_v2 }
   0xc   : > { %748 = vmatprep.subr.bf16.mxu0 (!%p190_p2), %v2004_v1  ;;  %1836 = vmatprep.subr.bf16.mxu1 (!%p190_p2), %v2004_v1 }
   0xd   : > { %s2375_s22 = smov (!%p219_p3, %s1707_s22), 63  ;;  %s2377_s8 = smov (!%p226_p4, %s1710_s8), 7 }
   0xe   : > { %s1803_s29 = sshll.u32 %s2375_s22, 4  ;;  %s1711_s10 = sshll.u32 %s2377_s8, 3 }
   0xf   : > { %749 = vmatpush1.bf16.msra.mxu0 %v1877_v3  ;;  %1852 = vmatpush1.bf16.msra.mxu1 %v1877_v3  ;;  %s2071_s9 = scalar_lea.vmem %s2368_s0, %s1803_s29  ;;  %s229_s15 = scalar_lea.vmem %s2373_s5, %s1711_s10 }
  0x10   : > { %750 = vmatprep.subr.bf16.mxu0 %v2004_v1  ;;  %1837 = vmatprep.subr.bf16.mxu1 %v2004_v1  ;;  %v1893_v6 = vld [vmem:[%s2071_s9 + $0x4] ss:$8 sps:$4 sm:$0xff]   ;;  %v1896_v8 = vld [vmem:[%s2071_s9 + $0x114] ss:$8 sps:$4 sm:$0xff]   ;;  %v1891_v19 = vld [vmem:[%s2071_s9] ss:$8 sps:$4 sm:$0xff]  }
  0x11   : > { %776 = vmatprep.mubr.bf16.mxu0 %v1893_v6  ;;  %912 = vmatprep.mubr.bf16.mxu1 %v1896_v8  ;;  %v1894_v20 = vld [vmem:[%s2071_s9 + $0x110] ss:$8 sps:$4 sm:$0xff]   ;;  %v1897_v21 = vld [vmem:[%s2071_s9 + $0x14] ss:$8 sps:$4 sm:$0xff]   ;;  %v1899_v22 = vld [vmem:[%s2071_s9 + $0x124] ss:$8 sps:$4 sm:$0xff]  }
  0x12   : > { %v1901_v23 = vld [vmem:[%s2071_s9 + $0x10] ss:$8 sps:$4 sm:$0xff]   ;;  %v1902_v24 = vld [vmem:[%s2071_s9 + $0x120] ss:$8 sps:$4 sm:$0xff]   ;;  %v1903_v25 = vld [vmem:[%s2071_s9 + $0x24] ss:$8 sps:$4 sm:$0xff]  }
  0x13   : > { %751 = vmatpush1.bf16.msra.mxu0 %v1878_v4  ;;  %1853 = vmatpush1.bf16.msra.mxu1 %v1878_v4  ;;  %v1905_v26 = vld [vmem:[%s2071_s9 + $0x134] ss:$8 sps:$4 sm:$0xff]   ;;  %v1907_v27 = vld [vmem:[%s2071_s9 + $0x20] ss:$8 sps:$4 sm:$0xff]   ;;  %v1908_v28 = vld [vmem:[%s2071_s9 + $0x130] ss:$8 sps:$4 sm:$0xff]  }
  0x14   : > { %752 = vmatprep.subr.bf16.mxu0 %v2004_v1  ;;  %1838 = vmatprep.subr.bf16.mxu1 %v2004_v1  ;;  %v1909_v29 = vld [vmem:[%s2071_s9 + $0x34] ss:$8 sps:$4 sm:$0xff]   ;;  %v1911_v30 = vld [vmem:[%s2071_s9 + $0x144] ss:$8 sps:$4 sm:$0xff]   ;;  %v1913_v31 = vld [vmem:[%s2071_s9 + $0x30] ss:$8 sps:$4 sm:$0xff]  }
  0x15   : > { %v1914_v32 = vld [vmem:[%s2071_s9 + $0x140] ss:$8 sps:$4 sm:$0xff]   ;;  %v1915_v33 = vld [vmem:[%s2071_s9 + $0x44] ss:$8 sps:$4 sm:$0xff]   ;;  %v1917_v34 = vld [vmem:[%s2071_s9 + $0x154] ss:$8 sps:$4 sm:$0xff]  }
  0x16   : > { %v1919_v35 = vld [vmem:[%s2071_s9 + $0x40] ss:$8 sps:$4 sm:$0xff]   ;;  %v1920_v36 = vld [vmem:[%s2071_s9 + $0x150] ss:$8 sps:$4 sm:$0xff]   ;;  %v1921_v37 = vld [vmem:[%s2071_s9 + $0x54] ss:$8 sps:$4 sm:$0xff]  }
  0x17   : > { %753 = vmatpush1.bf16.msra.mxu0 %v1879_v5  ;;  %1854 = vmatpush1.bf16.msra.mxu1 %v1879_v5  ;;  %v1923_v38 = vld [vmem:[%s2071_s9 + $0x164] ss:$8 sps:$4 sm:$0xff]   ;;  %v1925_v39 = vld [vmem:[%s2071_s9 + $0x50] ss:$8 sps:$4 sm:$0xff]   ;;  %v1926_v40 = vld [vmem:[%s2071_s9 + $0x160] ss:$8 sps:$4 sm:$0xff]  }
  0x18   : > { %754 = vmatprep.subr.bf16.mxu0 %v2004_v1  ;;  %1839 = vmatprep.subr.bf16.mxu1 %v2004_v1  ;;  %v1927_v41 = vld [vmem:[%s2071_s9 + $0x64] ss:$8 sps:$4 sm:$0xff]   ;;  %v1929_v42 = vld [vmem:[%s2071_s9 + $0x174] ss:$8 sps:$4 sm:$0xff]   ;;  %v1931_v43 = vld [vmem:[%s2071_s9 + $0x60] ss:$8 sps:$4 sm:$0xff]  }
  0x19   : > { %v1932_v44 = vld [vmem:[%s2071_s9 + $0x170] ss:$8 sps:$4 sm:$0xff]   ;;  %v1933_v45 = vld [vmem:[%s2071_s9 + $0x74] ss:$8 sps:$4 sm:$0xff]   ;;  %v1935_v46 = vld [vmem:[%s2071_s9 + $0x184] ss:$8 sps:$4 sm:$0xff]  }
  0x1a   : > { %v1937_v47 = vld [vmem:[%s2071_s9 + $0x70] ss:$8 sps:$4 sm:$0xff]   ;;  %v1938_v48 = vld [vmem:[%s2071_s9 + $0x180] ss:$8 sps:$4 sm:$0xff]   ;;  %v1939_v49 = vld [vmem:[%s2071_s9 + $0x84] ss:$8 sps:$4 sm:$0xff]  }
  0x1b   : > { %755 = vmatpush1.bf16.msra.mxu0 %v1880_v7  ;;  %1855 = vmatpush1.bf16.msra.mxu1 %v1880_v7  ;;  %v1941_v50 = vld [vmem:[%s2071_s9 + $0x194] ss:$8 sps:$4 sm:$0xff]   ;;  %v1943_v51 = vld [vmem:[%s2071_s9 + $0x80] ss:$8 sps:$4 sm:$0xff]   ;;  %v1944_v52 = vld [vmem:[%s2071_s9 + $0x190] ss:$8 sps:$4 sm:$0xff]  }
  0x1c   : > { %756 = vmatprep.subr.bf16.mxu0 %v2004_v1  ;;  %1840 = vmatprep.subr.bf16.mxu1 %v2004_v1  ;;  %v1945_v53 = vld [vmem:[%s2071_s9 + $0x94] ss:$8 sps:$4 sm:$0xff]   ;;  %v1947_v54 = vld [vmem:[%s2071_s9 + $0x1a4] ss:$8 sps:$4 sm:$0xff]   ;;  %v1949_v55 = vld [vmem:[%s2071_s9 + $0x90] ss:$8 sps:$4 sm:$0xff]  }
  0x1d   : > { %v1950_v56 = vld [vmem:[%s2071_s9 + $0x1a0] ss:$8 sps:$4 sm:$0xff]   ;;  %v1951_v57 = vld [vmem:[%s2071_s9 + $0xa4] ss:$8 sps:$4 sm:$0xff]   ;;  %v1953_v58 = vld [vmem:[%s2071_s9 + $0x1b4] ss:$8 sps:$4 sm:$0xff]  }
  0x1e   : > { %v1955_v59 = vld [vmem:[%s2071_s9 + $0xa0] ss:$8 sps:$4 sm:$0xff]   ;;  %v1956_v60 = vld [vmem:[%s2071_s9 + $0x1b0] ss:$8 sps:$4 sm:$0xff]   ;;  %v1957_v61 = vld [vmem:[%s2071_s9 + $0xb4] ss:$8 sps:$4 sm:$0xff]  }
  0x1f   : > { %757 = vmatpush1.bf16.msra.mxu0 %v1881_v9  ;;  %1856 = vmatpush1.bf16.msra.mxu1 %v1881_v9  ;;  %v1959_v62 = vld [vmem:[%s2071_s9 + $0x1c4] ss:$8 sps:$4 sm:$0xff]   ;;  %v1961_v63 = vld [vmem:[%s2071_s9 + $0xb0] ss:$8 sps:$4 sm:$0xff]   ;;  %v1962_v0 = vld [vmem:[%s2071_s9 + $0x1c0] ss:$8 sps:$4 sm:$0xff]  }
  0x20   : > { %758 = vmatprep.subr.bf16.mxu0 %v2004_v1  ;;  %1841 = vmatprep.subr.bf16.mxu1 %v2004_v1  ;;  %v1965_v2 = vld [vmem:[%s2071_s9 + $0x1d4] ss:$8 sps:$4 sm:$0xff]   ;;  %v1967_v3 = vld [vmem:[%s2071_s9 + $0xc0] ss:$8 sps:$4 sm:$0xff]   ;;  %v1968_v4 = vld [vmem:[%s2071_s9 + $0x1d0] ss:$8 sps:$4 sm:$0xff]  }
  0x21   : > { %v1969_v5 = vld [vmem:[%s2071_s9 + $0xd4] ss:$8 sps:$4 sm:$0xff]   ;;  %v1971_v6 = vld [vmem:[%s2071_s9 + $0x1e4] ss:$8 sps:$4 sm:$0xff]   ;;  %v1973_v7 = vld [vmem:[%s2071_s9 + $0xd0] ss:$8 sps:$4 sm:$0xff]  }
  0x22   : > { %v1974_v8 = vld [vmem:[%s2071_s9 + $0x1e0] ss:$8 sps:$4 sm:$0xff]   ;;  %v1975_v9 = vld [vmem:[%s2071_s9 + $0xe4] ss:$8 sps:$4 sm:$0xff]  }
  0x23   : > { %759 = vmatpush1.bf16.msra.mxu0 %v1882_v10  ;;  %1857 = vmatpush1.bf16.msra.mxu1 %v1882_v10  ;;  %v1977_v10 = vld [vmem:[%s2071_s9 + $0x1f4] ss:$8 sps:$4 sm:$0xff]  }
  0x24   : > { %760 = vmatprep.subr.bf16.mxu0 %v2004_v1  ;;  %1842 = vmatprep.subr.bf16.mxu1 %v2004_v1 }
  0x27   : > { %761 = vmatpush1.bf16.msra.mxu0 %v1883_v11  ;;  %1858 = vmatpush1.bf16.msra.mxu1 %v1883_v11  ;;  %v1979_v11 = vld [vmem:[%s2071_s9 + $0xe0] ss:$8 sps:$4 sm:$0xff]  }
  0x28   : > { %762 = vmatprep.subr.bf16.mxu0 %v2004_v1  ;;  %1843 = vmatprep.subr.bf16.mxu1 %v2004_v1 }
  0x2b   : > { %763 = vmatpush1.bf16.msra.mxu0 %v1884_v12  ;;  %1859 = vmatpush1.bf16.msra.mxu1 %v1884_v12  ;;  %v1980_v12 = vld [vmem:[%s2071_s9 + $0x1f0] ss:$8 sps:$4 sm:$0xff]  }
  0x2c   : > { %764 = vmatprep.subr.bf16.mxu0 %v2004_v1  ;;  %1844 = vmatprep.subr.bf16.mxu1 %v2004_v1 }
  0x2f   : > { %765 = vmatpush1.bf16.msra.mxu0 %v1885_v13  ;;  %1860 = vmatpush1.bf16.msra.mxu1 %v1885_v13  ;;  %v1981_v13 = vld [vmem:[%s2071_s9 + $0xf4] ss:$8 sps:$4 sm:$0xff]  }
  0x30   : > { %766 = vmatprep.subr.bf16.mxu0 %v2004_v1  ;;  %1845 = vmatprep.subr.bf16.mxu1 %v2004_v1 }
  0x33   : > { %767 = vmatpush1.bf16.msra.mxu0 %v1886_v14  ;;  %1861 = vmatpush1.bf16.msra.mxu1 %v1886_v14  ;;  %v1983_v14 = vld [vmem:[%s2071_s9 + $0xf0] ss:$8 sps:$4 sm:$0xff]  }
  0x34   : > { %768 = vmatprep.subr.bf16.mxu0 %v2004_v1  ;;  %1846 = vmatprep.subr.bf16.mxu1 %v2004_v1 }
  0x37   : > { %769 = vmatpush1.bf16.msra.mxu0 %v1887_v15  ;;  %1862 = vmatpush1.bf16.msra.mxu1 %v1887_v15  ;;  %v1984_v15 = vld [vmem:[%s2071_s9 + $0x104] ss:$8 sps:$4 sm:$0xff]  }
  0x38   : > { %770 = vmatprep.subr.bf16.mxu0 %v2004_v1  ;;  %1847 = vmatprep.subr.bf16.mxu1 %v2004_v1 }
  0x3b   : > { %771 = vmatpush1.bf16.msra.mxu0 %v1888_v16  ;;  %1863 = vmatpush1.bf16.msra.mxu1 %v1888_v16  ;;  %v1986_v16 = vld [vmem:[%s2071_s9 + $0x100] ss:$8 sps:$4 sm:$0xff]  }
  0x3c   : > { %772 = vmatprep.subr.bf16.mxu0 %v2004_v1  ;;  %1848 = vmatprep.subr.bf16.mxu1 %v2004_v1 }
  0x3f   : > { %773 = vmatpush1.bf16.msra.mxu0 %v1889_v17  ;;  %1864 = vmatpush1.bf16.msra.mxu1 %v1889_v17  ;;  %v1987_v17 = vld [vmem:[%s2371_s3] sm:$0xff]  }
  0x40   : > { %774 = vmatprep.subr.bf16.mxu0 %v2004_v1  ;;  %1849 = vmatprep.subr.bf16.mxu1 %v2004_v1  ;;  %v1963_v1 = vld [vmem:[%s2071_s9 + $0xc4] ss:$8 sps:$4 sm:$0xff]  }
  0x43   : > { %775 = vmatpush1.bf16.msra.mxu0 %v1890_v18  ;;  %1865 = vmatpush1.bf16.msra.mxu1 %v1890_v18  ;;  %v1988_v18 = vld [vmem:[%s2371_s3 + $0x8] sm:$0xff]  }
  0x44   : > { %1814 = vmatprep.subr.bf16.mxu1 %v1987_v17 }
  0x46   : > { %777 = vmatmul.mubr.bf16.vlgmr.msra.gmra.mrb[0].mxu0 %v1891_v19  ;;  %913 = vmatmul.mubr.bf16.vlgmr.msra.gmra.mrb[0].mxu1 %v1894_v20  ;;  %v1989_v19 = vld [vmem:[%s2371_s3 + $0x10] sm:$0xff]   ;;  %v1990_v20 = vld [vmem:[%s2371_s3 + $0x18] sm:$0xff]  }
  0x47   : > { %784 = vmatprep.mubr.bf16.mxu0 %v1897_v21  ;;  %920 = vmatprep.mubr.bf16.mxu1 %v1899_v22  ;;  %v1991_v21 = vld [vmem:[%s2371_s3 + $0x20] sm:$0xff]  }
  0x48   : > { %1815 = vmatpush3.bf16.msra.mxu1 %v1987_v17  ;;  %v2212_v22 = vld [vmem:[%s2370_s2] sm:$0xff] }
  0x49   : > { %1816 = vmatprep.subr.bf16.mxu1 %v1988_v18 }
  0x4c   : > { %1817 = vmatpush3.bf16.msra.mxu1 %v1988_v18 }
  0x4d   : > { %1818 = vmatprep.subr.bf16.mxu1 %v1989_v19 }
  0x4e   : > { %785 = vmatmul.mubr.bf16.gmra.mrb[4].mxu0 %v1901_v23  ;;  %921 = vmatmul.mubr.bf16.gmra.mrb[4].mxu1 %v1902_v24  ;;  %v2217_v24 = vld [vmem:[%s2370_s2 + $0x8] sm:$0xff] }
  0x4f   : > { %792 = vmatprep.mubr.bf16.mxu0 %v1903_v25  ;;  %928 = vmatprep.mubr.bf16.mxu1 %v1905_v26 }
  0x50   : > { %1819 = vmatpush3.bf16.msra.mxu1 %v1989_v19 }
  0x51   : > { %1820 = vmatprep.subr.bf16.mxu1 %v1990_v20 }
  0x54   : > { %1821 = vmatpush3.bf16.msra.mxu1 %v1990_v20 }
  0x55   : > { %1822 = vmatprep.subr.bf16.mxu1 %v1991_v21 }
  0x56   : > { %793 = vmatmul.mubr.bf16.gmra.mrb[8].mxu0 %v1907_v27  ;;  %929 = vmatmul.mubr.bf16.gmra.mrb[8].mxu1 %v1908_v28 }
  0x57   : > { %800 = vmatprep.mubr.bf16.mxu0 %v1909_v29  ;;  %936 = vmatprep.mubr.bf16.mxu1 %v1911_v30 }
  0x58   : > { %1823 = vmatpush3.bf16.msra.mxu1 %v1991_v21 }
  0x5e   : > { %801 = vmatmul.mubr.bf16.gmra.mrb[12].mxu0 %v1913_v31  ;;  %937 = vmatmul.mubr.bf16.gmra.mrb[12].mxu1 %v1914_v32 }
  0x5f   : > { %808 = vmatprep.mubr.bf16.mxu0 %v1915_v33  ;;  %944 = vmatprep.mubr.bf16.mxu1 %v1917_v34 }
  0x66   : > { %809 = vmatmul.mubr.bf16.gmra.mrb[16].mxu0 %v1919_v35  ;;  %945 = vmatmul.mubr.bf16.gmra.mrb[16].mxu1 %v1920_v36 }
  0x67   : > { %816 = vmatprep.mubr.bf16.mxu0 %v1921_v37  ;;  %952 = vmatprep.mubr.bf16.mxu1 %v1923_v38 }
  0x6e   : > { %817 = vmatmul.mubr.bf16.gmra.mrb[20].mxu0 %v1925_v39  ;;  %953 = vmatmul.mubr.bf16.gmra.mrb[20].mxu1 %v1926_v40 }
  0x6f   : > { %824 = vmatprep.mubr.bf16.mxu0 %v1927_v41  ;;  %960 = vmatprep.mubr.bf16.mxu1 %v1929_v42 }
  0x76   : > { %825 = vmatmul.mubr.bf16.gmra.mrb[24].mxu0 %v1931_v43  ;;  %961 = vmatmul.mubr.bf16.gmra.mrb[24].mxu1 %v1932_v44  ;;  %v1992_v44 = vld [vmem:[%s2371_s3 + $0x28] sm:$0xff]  }
  0x77   : > { %832 = vmatprep.mubr.bf16.mxu0 %v1933_v45  ;;  %968 = vmatprep.mubr.bf16.mxu1 %v1935_v46 }
  0x78   : > { %1824 = vmatprep.subr.bf16.mxu1 %v1992_v44 }
  0x79   : > { %1825 = vmatpush3.bf16.msra.mxu1 %v1992_v44  ;;  %v1994_v44 = vld [vmem:[%s2371_s3 + $0x38] sm:$0xff]  }
  0x7e   : > { %833 = vmatmul.mubr.bf16.gmra.mrb[28].mxu0 %v1937_v47  ;;  %969 = vmatmul.mubr.bf16.gmra.mrb[28].mxu1 %v1938_v48 }
  0x7f   : > { %840 = vmatprep.mubr.bf16.mxu0 %v1939_v49  ;;  %976 = vmatprep.mubr.bf16.mxu1 %v1941_v50 }
  0x86   : > { %841 = vmatmul.mubr.bf16.gmra.mrb[32].mxu0 %v1943_v51  ;;  %977 = vmatmul.mubr.bf16.gmra.mrb[32].mxu1 %v1944_v52 }
  0x87   : > { %848 = vmatprep.mubr.bf16.mxu0 %v1945_v53  ;;  %984 = vmatprep.mubr.bf16.mxu1 %v1947_v54 }
  0x8e   : > { %849 = vmatmul.mubr.bf16.gmra.mrb[36].mxu0 %v1949_v55  ;;  %985 = vmatmul.mubr.bf16.gmra.mrb[36].mxu1 %v1950_v56 }
  0x8f   : > { %856 = vmatprep.mubr.bf16.mxu0 %v1951_v57  ;;  %992 = vmatprep.mubr.bf16.mxu1 %v1953_v58 }
  0x96   : > { %857 = vmatmul.mubr.bf16.gmra.mrb[40].mxu0 %v1955_v59  ;;  %993 = vmatmul.mubr.bf16.gmra.mrb[40].mxu1 %v1956_v60 }
  0x97   : > { %864 = vmatprep.mubr.bf16.mxu0 %v1957_v61  ;;  %1000 = vmatprep.mubr.bf16.mxu1 %v1959_v62 }
  0x9e   : > { %865 = vmatmul.mubr.bf16.gmra.mrb[44].mxu0 %v1961_v63  ;;  %1001 = vmatmul.mubr.bf16.gmra.mrb[44].mxu1 %v1962_v0 }
  0x9f   : > { %872 = vmatprep.mubr.bf16.mxu0 %v1963_v1  ;;  %1008 = vmatprep.mubr.bf16.mxu1 %v1965_v2 }
  0xa6   : > { %873 = vmatmul.mubr.bf16.gmra.mrb[48].mxu0 %v1967_v3  ;;  %1009 = vmatmul.mubr.bf16.gmra.mrb[48].mxu1 %v1968_v4 }
  0xa7   : > { %880 = vmatprep.mubr.bf16.mxu0 %v1969_v5  ;;  %1016 = vmatprep.mubr.bf16.mxu1 %v1971_v6 }
  0xae   : > { %881 = vmatmul.mubr.bf16.gmra.mrb[52].mxu0 %v1973_v7  ;;  %1017 = vmatmul.mubr.bf16.gmra.mrb[52].mxu1 %v1974_v8 }
  0xaf   : > { %888 = vmatprep.mubr.bf16.mxu0 %v1975_v9  ;;  %1024 = vmatprep.mubr.bf16.mxu1 %v1977_v10 }
  0xb6   : > { %889 = vmatmul.mubr.bf16.gmra.mrb[56].mxu0 %v1979_v11  ;;  %1025 = vmatmul.mubr.bf16.gmra.mrb[56].mxu1 %v1980_v12 }
  0xb7   : > { %896 = vmatprep.mubr.bf16.mxu0 %v1981_v13 }
  0xbe   : > { %897 = vmatmul.mubr.bf16.gmra.mrb[60].mxu0 %v1983_v14 }
  0xbf   : > { %904 = vmatprep.mubr.bf16.mxu0 %v1984_v15 }
  0xc6   : > { %905 = vmatmul.mubr.bf16.gmra.mrb[64].mxu0 %v1986_v16 }
 0x119   : > { %v778_v23 = vpop.f32.mrb[0].mxu0  ;;  %v914_v25 = vpop.f32.mrb[0].mxu1 }
 0x11a   : > { %v1035_v26 = vadd.f32 %v2212_v22, %v778_v23  ;;  %v780_v27 = vpop.f32.mrb[1].mxu0  ;;  %v1069_v28 = vadd.f32 %v2212_v22, %v914_v25  ;;  %v916_v29 = vpop.f32.mrb[1].mxu1 }
 0x11b   : > { %v781_v30 = vpop.f32.mrb[2].mxu0  ;;  %v917_v31 = vpop.f32.mrb[2].mxu1 }
 0x11c   : > { %v1036_v32 = vadd.f32 %v2217_v24, %v781_v30  ;;  %v783_v33 = vpop.f32.mrb[3].mxu0  ;;  %v1133_v34 = vmax.f32 %v1069_v28, 0.0  ;;  %v1070_v35 = vadd.f32 %v2217_v24, %v917_v31  ;;  %v919_v36 = vpop.f32.mrb[3].mxu1  ;;  %v1099_v37 = vmax.f32 %v1035_v26, 0.0 }
 0x11e   : > { %v1100_v38 = vmax.f32 %v1036_v32, 0.0  ;;  %v1134_v39 = vmax.f32 %v1070_v35, 0.0 }
 0x120   : > { %v1163_v40 = vmax.f32 %v1099_v37, %v1100_v38  ;;  %v2223_v41 = vmax.f32 %v1133_v34, %v1134_v39  ;;  %v1993_v34 = vld [vmem:[%s2371_s3 + $0x30] sm:$0xff]  }
 0x121   : > { %v786_v42 = vpop.f32.mrb[4].mxu0  ;;  %v922_v43 = vpop.f32.mrb[4].mxu1  ;;  %1826 = vmatprep.subr.bf16.mxu1 %v1993_v34 }
 0x122   : > { %v1164_v45 = vrot.slane %v1163_v40, 4  ;;  %v1037_v46 = vadd.f32 %v2212_v22, %v786_v42  ;;  %v788_v47 = vpop.f32.mrb[5].mxu0  ;;  %v1071_v48 = vadd.f32 %v2212_v22, %v922_v43  ;;  %v924_v49 = vpop.f32.mrb[5].mxu1  ;;  %1827 = vmatpush3.bf16.msra.mxu1 %v1993_v34 }
 0x123   : > { %v789_v50 = vpop.f32.mrb[6].mxu0  ;;  %v925_v51 = vpop.f32.mrb[6].mxu1  ;;  %1828 = vmatprep.subr.bf16.mxu1 %v1994_v44 }
 0x124   : > { %v1165_v52 = vmax.f32 %v1163_v40, %v1164_v45  ;;  %v1038_v53 = vadd.f32 %v2217_v24, %v789_v50  ;;  %v791_v54 = vpop.f32.mrb[7].mxu0  ;;  %v927_v55 = vpop.f32.mrb[7].mxu1  ;;  %v1135_v56 = vmax.f32 %v1071_v48, 0.0  ;;  %v1072_v57 = vadd.f32 %v2217_v24, %v925_v51 }
 0x125   : > { %v1101_v59 = vmax.f32 %v1037_v46, 0.0 }
 0x126   : > { %v1166_v58 = vrot.slane %v1165_v52, 2  ;;  %v1102_v60 = vmax.f32 %v1038_v53, 0.0  ;;  %v1136_v61 = vmax.f32 %v1072_v57, 0.0  ;;  %1829 = vmatpush3.bf16.msra.mxu1 %v1994_v44 }
 0x128   : > { %v1167_v62 = vmax.f32 %v1165_v52, %v1166_v58  ;;  %v1170_v63 = vmax.f32 %v1101_v59, %v1102_v60  ;;  %v2232_v1 = vmax.f32 %v1135_v56, %v1136_v61 }
 0x129   : > { %v794_v0 = vpop.f32.mrb[8].mxu0  ;;  %v930_v2 = vpop.f32.mrb[8].mxu1 }
 0x12a   : > { %v1171_v3 = vrot.slane %v1170_v63, 4  ;;  %v796_v4 = vpop.f32.mrb[9].mxu0  ;;  %v932_v5 = vpop.f32.mrb[9].mxu1  ;;  %v1039_v6 = vadd.f32 %v2212_v22, %v794_v0  ;;  %v1073_v8 = vadd.f32 %v2212_v22, %v930_v2  ;;  %v1168_v10 = vrot.slane %v1167_v62, 1 }
 0x12b   : > { %v797_v7 = vpop.f32.mrb[10].mxu0  ;;  %v933_v9 = vpop.f32.mrb[10].mxu1 }
 0x12c   : > { %v1172_v11 = vmax.f32 %v1170_v63, %v1171_v3  ;;  %v799_v12 = vpop.f32.mrb[11].mxu0  ;;  %v935_v13 = vpop.f32.mrb[11].mxu1  ;;  %v1040_v14 = vadd.f32 %v2217_v24, %v797_v7  ;;  %v1137_v15 = vmax.f32 %v1073_v8, 0.0  ;;  %v1074_v16 = vadd.f32 %v2217_v24, %v933_v9 }
 0x12d   : > { %v1103_v18 = vmax.f32 %v1039_v6, 0.0  ;;  %v1169_v21 = vmax.f32 %v1167_v62, %v1168_v10 }
 0x12e   : > { %v1173_v17 = vrot.slane %v1172_v11, 2  ;;  %v1104_v19 = vmax.f32 %v1040_v14, 0.0  ;;  %v1138_v20 = vmax.f32 %v1074_v16, 0.0 }
 0x12f   : > { %v1387_v38 = vpack.c.bf16 %v1169_v21, %v1169_v21 }
 0x130   : > { %v1174_v23 = vmax.f32 %v1172_v11, %v1173_v17  ;;  %v1177_v25 = vmax.f32 %v1103_v18, %v1104_v19  ;;  %v2238_v27 = vmax.f32 %v1137_v15, %v1138_v20 }
 0x131   : > { %v802_v26 = vpop.f32.mrb[12].mxu0  ;;  %v938_v28 = vpop.f32.mrb[12].mxu1  ;;  %v1474_v53 = vunpack.c.l.b16 %v1387_v38 }
 0x132   : > { %v1175_v29 = vrot.slane %v1174_v23, 1  ;;  %v1041_v30 = vadd.f32 %v2212_v22, %v802_v26  ;;  %v804_v31 = vpop.f32.mrb[13].mxu0  ;;  %v1075_v32 = vadd.f32 %v2212_v22, %v938_v28  ;;  %v940_v33 = vpop.f32.mrb[13].mxu1  ;;  %v1178_v35 = vrot.slane %v1177_v25, 4 }
 0x133   : > { %v805_v36 = vpop.f32.mrb[14].mxu0  ;;  %v941_v37 = vpop.f32.mrb[14].mxu1 }
 0x134   : > { %v1176_v39 = vmax.f32 %v1174_v23, %v1175_v29  ;;  %v1042_v40 = vadd.f32 %v2217_v24, %v805_v36  ;;  %v807_v42 = vpop.f32.mrb[15].mxu0  ;;  %v943_v43 = vpop.f32.mrb[15].mxu1  ;;  %v1179_v45 = vmax.f32 %v1177_v25, %v1178_v35  ;;  %v1139_v46 = vmax.f32 %v1075_v32, 0.0 }
 0x135   : > { %v1076_v47 = vadd.f32 %v2217_v24, %v941_v37  ;;  %v1105_v49 = vmax.f32 %v1041_v30, 0.0 }
 0x136   : > { %v1388_v48 = vpack.c.bf16 %v1176_v39, %v1176_v39  ;;  %v1106_v50 = vmax.f32 %v1042_v40, 0.0  ;;  %v1180_v51 = vrot.slane %v1179_v45, 2 }
 0x137   : > { %v1140_v52 = vmax.f32 %v1076_v47, 0.0 }
 0x138   : > { %v1475_v54 = vunpack.c.l.b16 %v1388_v48  ;;  %v1184_v55 = vmax.f32 %v1105_v49, %v1106_v50  ;;  %v1181_v56 = vmax.f32 %v1179_v45, %v1180_v51 }
 0x139   : > { %v810_v57 = vpop.f32.mrb[16].mxu0  ;;  %v2250_v58 = vmax.f32 %v1139_v46, %v1140_v52  ;;  %v946_v59 = vpop.f32.mrb[16].mxu1 }
 0x13a   : > { %v1507_v60 = vsel %vm1506_vm0, %v1475_v54, %v1474_v53  ;;  %v1185_v61 = vrot.slane %v1184_v55, 4  ;;  %v1043_v62 = vadd.f32 %v2212_v22, %v810_v57  ;;  %v812_v63 = vpop.f32.mrb[17].mxu0  ;;  %v1077_v0 = vadd.f32 %v2212_v22, %v946_v59  ;;  %v948_v2 = vpop.f32.mrb[17].mxu1 }
 0x13b   : > { %v1182_v3 = vrot.slane %v1181_v56, 1  ;;  %v813_v4 = vpop.f32.mrb[18].mxu0  ;;  %v949_v5 = vpop.f32.mrb[18].mxu1 }
 0x13c   : > { %v1186_v6 = vmax.f32 %v1184_v55, %v1185_v61  ;;  %v1044_v7 = vadd.f32 %v2217_v24, %v813_v4  ;;  %v815_v8 = vpop.f32.mrb[19].mxu0  ;;  %v951_v9 = vpop.f32.mrb[19].mxu1  ;;  %v1141_v11 = vmax.f32 %v1077_v0, 0.0  ;;  %v1078_v12 = vadd.f32 %v2217_v24, %v949_v5 }
 0x13d   : > { %v1183_v10 = vmax.f32 %v1181_v56, %v1182_v3  ;;  %v1107_v14 = vmax.f32 %v1043_v62, 0.0 }
 0x13e   : > { %v1187_v13 = vrot.slane %v1186_v6, 2  ;;  %v1108_v15 = vmax.f32 %v1044_v7, 0.0  ;;  %v1142_v17 = vmax.f32 %v1078_v12, 0.0 }
 0x13f   : > { %v1389_v16 = vpack.c.bf16 %v1183_v10, %v1183_v10 }
 0x140   : > { %v1188_v18 = vmax.f32 %v1186_v6, %v1187_v13  ;;  %v1191_v19 = vmax.f32 %v1107_v14, %v1108_v15  ;;  %v2257_v23 = vmax.f32 %v1141_v11, %v1142_v17 }
 0x141   : > { %v1476_v20 = vunpack.c.l.b16 %v1389_v16  ;;  %v818_v21 = vpop.f32.mrb[20].mxu0  ;;  %v954_v25 = vpop.f32.mrb[20].mxu1 }
 0x142   : > { %v1189_v26 = vrot.slane %v1188_v18, 1  ;;  %v1192_v28 = vrot.slane %v1191_v19, 4  ;;  %v1045_v29 = vadd.f32 %v2212_v22, %v818_v21  ;;  %v820_v30 = vpop.f32.mrb[21].mxu0  ;;  %v1079_v31 = vadd.f32 %v2212_v22, %v954_v25  ;;  %v956_v32 = vpop.f32.mrb[21].mxu1 }
 0x143   : > { %v1509_v33 = vsel %vm1508_vm1, %v1476_v20, %v1507_v60  ;;  %v821_v34 = vpop.f32.mrb[22].mxu0  ;;  %v957_v35 = vpop.f32.mrb[22].mxu1 }
 0x144   : > { %v1190_v36 = vmax.f32 %v1188_v18, %v1189_v26  ;;  %v1193_v37 = vmax.f32 %v1191_v19, %v1192_v28  ;;  %v1046_v38 = vadd.f32 %v2217_v24, %v821_v34  ;;  %v823_v39 = vpop.f32.mrb[23].mxu0  ;;  %v959_v40 = vpop.f32.mrb[23].mxu1  ;;  %v1143_v42 = vmax.f32 %v1079_v31, 0.0 }
 0x145   : > { %v1080_v43 = vadd.f32 %v2217_v24, %v957_v35  ;;  %v1109_v46 = vmax.f32 %v1045_v29, 0.0 }
 0x146   : > { %v1390_v44 = vpack.c.bf16 %v1190_v36, %v1190_v36  ;;  %v1194_v45 = vrot.slane %v1193_v37, 2  ;;  %v1110_v47 = vmax.f32 %v1046_v38, 0.0 }
 0x147   : > { %v1144_v48 = vmax.f32 %v1080_v43, 0.0 }
 0x148   : > { %v1477_v49 = vunpack.c.l.b16 %v1390_v44  ;;  %v1195_v50 = vmax.f32 %v1193_v37, %v1194_v45  ;;  %v1198_v51 = vmax.f32 %v1109_v46, %v1110_v47 }
 0x149   : > { %v826_v52 = vpop.f32.mrb[24].mxu0  ;;  %v2264_v53 = vmax.f32 %v1143_v42, %v1144_v48  ;;  %v962_v54 = vpop.f32.mrb[24].mxu1 }
 0x14a   : > { %v1196_v55 = vrot.slane %v1195_v50, 1  ;;  %v1199_v56 = vrot.slane %v1198_v51, 4  ;;  %v1047_v57 = vadd.f32 %v2212_v22, %v826_v52  ;;  %v828_v59 = vpop.f32.mrb[25].mxu0  ;;  %v1081_v60 = vadd.f32 %v2212_v22, %v962_v54  ;;  %v964_v61 = vpop.f32.mrb[25].mxu1 }
 0x14b   : > { %v829_v62 = vpop.f32.mrb[26].mxu0  ;;  %v965_v63 = vpop.f32.mrb[26].mxu1  ;;  %v1511_v0 = vsel %vm1510_vm2, %v1477_v49, %v1509_v33 }
 0x14c   : > { %v1197_v2 = vmax.f32 %v1195_v50, %v1196_v55  ;;  %v1200_v3 = vmax.f32 %v1198_v51, %v1199_v56  ;;  %v1048_v4 = vadd.f32 %v2217_v24, %v829_v62  ;;  %v831_v5 = vpop.f32.mrb[27].mxu0  ;;  %v967_v6 = vpop.f32.mrb[27].mxu1  ;;  %v1145_v7 = vmax.f32 %v1081_v60, 0.0 }
 0x14d   : > { %v1082_v8 = vadd.f32 %v2217_v24, %v965_v63  ;;  %v1111_v11 = vmax.f32 %v1047_v57, 0.0 }
 0x14e   : > { %v1391_v9 = vpack.c.bf16 %v1197_v2, %v1197_v2  ;;  %v1201_v10 = vrot.slane %v1200_v3, 2  ;;  %v1112_v12 = vmax.f32 %v1048_v4, 0.0 }
 0x14f   : > { %v1146_v13 = vmax.f32 %v1082_v8, 0.0 }
 0x150   : > { %v1478_v14 = vunpack.c.l.b16 %v1391_v9  ;;  %v1202_v15 = vmax.f32 %v1200_v3, %v1201_v10  ;;  %v1205_v16 = vmax.f32 %v1111_v11, %v1112_v12 }
 0x151   : > { %v834_v17 = vpop.f32.mrb[28].mxu0  ;;  %v2271_v18 = vmax.f32 %v1145_v7, %v1146_v13  ;;  %v970_v19 = vpop.f32.mrb[28].mxu1 }
 0x152   : > { %v1203_v20 = vrot.slane %v1202_v15, 1  ;;  %v1206_v21 = vrot.slane %v1205_v16, 4  ;;  %v1049_v25 = vadd.f32 %v2212_v22, %v834_v17  ;;  %v836_v26 = vpop.f32.mrb[29].mxu0  ;;  %v1083_v28 = vadd.f32 %v2212_v22, %v970_v19  ;;  %v972_v29 = vpop.f32.mrb[29].mxu1 }
 0x153   : > { %v837_v30 = vpop.f32.mrb[30].mxu0  ;;  %v973_v31 = vpop.f32.mrb[30].mxu1  ;;  %v1513_v32 = vsel %vm1512_vm3, %v1478_v14, %v1511_v0 }
 0x154   : > { %v1204_v33 = vmax.f32 %v1202_v15, %v1203_v20  ;;  %v1207_v34 = vmax.f32 %v1205_v16, %v1206_v21  ;;  %v1050_v35 = vadd.f32 %v2217_v24, %v837_v30  ;;  %v839_v36 = vpop.f32.mrb[31].mxu0  ;;  %v975_v37 = vpop.f32.mrb[31].mxu1  ;;  %v1147_v38 = vmax.f32 %v1083_v28, 0.0 }
 0x155   : > { %v1084_v39 = vadd.f32 %v2217_v24, %v973_v31  ;;  %v1113_v43 = vmax.f32 %v1049_v25, 0.0 }
 0x156   : > { %v1392_v40 = vpack.c.bf16 %v1204_v33, %v1204_v33  ;;  %v1208_v42 = vrot.slane %v1207_v34, 2  ;;  %v1114_v44 = vmax.f32 %v1050_v35, 0.0 }
 0x157   : > { %v1148_v45 = vmax.f32 %v1084_v39, 0.0 }
 0x158   : > { %v1479_v46 = vunpack.c.l.b16 %v1392_v40  ;;  %v1209_v47 = vmax.f32 %v1207_v34, %v1208_v42  ;;  %v1212_v48 = vmax.f32 %v1113_v43, %v1114_v44 }
 0x159   : > { %v842_v49 = vpop.f32.mrb[32].mxu0  ;;  %v1331_v50 = vmax.f32 %v1147_v38, %v1148_v45  ;;  %v978_v51 = vpop.f32.mrb[32].mxu1 }
 0x15a   : > { %v1210_v52 = vrot.slane %v1209_v47, 1  ;;  %v1213_v54 = vrot.slane %v1212_v48, 4  ;;  %v1051_v55 = vadd.f32 %v2212_v22, %v842_v49  ;;  %v844_v56 = vpop.f32.mrb[33].mxu0  ;;  %v1085_v57 = vadd.f32 %v2212_v22, %v978_v51  ;;  %v980_v59 = vpop.f32.mrb[33].mxu1 }
 0x15b   : > { %v845_v60 = vpop.f32.mrb[34].mxu0  ;;  %v1332_v61 = vrot.slane %v1331_v50, 4  ;;  %v981_v62 = vpop.f32.mrb[34].mxu1  ;;  %v1515_v63 = vsel %vm1514_vm4, %v1479_v46, %v1513_v32 }
 0x15c   : > { %v1211_v0 = vmax.f32 %v1209_v47, %v1210_v52  ;;  %v1214_v2 = vmax.f32 %v1212_v48, %v1213_v54  ;;  %v1052_v3 = vadd.f32 %v2217_v24, %v845_v60  ;;  %v847_v4 = vpop.f32.mrb[35].mxu0  ;;  %v983_v5 = vpop.f32.mrb[35].mxu1  ;;  %v1149_v7 = vmax.f32 %v1085_v57, 0.0 }
 0x15d   : > { %v1333_v6 = vmax.f32 %v1331_v50, %v1332_v61  ;;  %v1086_v8 = vadd.f32 %v2217_v24, %v981_v62  ;;  %v1115_v11 = vmax.f32 %v1051_v55, 0.0 }
 0x15e   : > { %v1393_v9 = vpack.c.bf16 %v1211_v0, %v1211_v0  ;;  %v1215_v10 = vrot.slane %v1214_v2, 2  ;;  %v1116_v12 = vmax.f32 %v1052_v3, 0.0 }
 0x15f   : > { %v1334_v13 = vrot.slane %v1333_v6, 2  ;;  %v1150_v14 = vmax.f32 %v1086_v8, 0.0 }
 0x160   : > { %v1480_v15 = vunpack.c.l.b16 %v1393_v9  ;;  %v1216_v16 = vmax.f32 %v1214_v2, %v1215_v10  ;;  %v1219_v17 = vmax.f32 %v1115_v11, %v1116_v12 }
 0x161   : > { %v1335_v19 = vmax.f32 %v1333_v6, %v1334_v13  ;;  %v1338_v20 = vmax.f32 %v1149_v7, %v1150_v14  ;;  %v850_v21 = vpop.f32.mrb[36].mxu0  ;;  %v986_v25 = vpop.f32.mrb[36].mxu1 }
 0x162   : > { %v1217_v26 = vrot.slane %v1216_v16, 1  ;;  %v1220_v28 = vrot.slane %v1219_v17, 4  ;;  %v1087_v29 = vadd.f32 %v2212_v22, %v986_v25  ;;  %v852_v30 = vpop.f32.mrb[37].mxu0  ;;  %v988_v31 = vpop.f32.mrb[37].mxu1  ;;  %v1053_v34 = vadd.f32 %v2212_v22, %v850_v21 }
 0x163   : > { %v1336_v32 = vrot.slane %v1335_v19, 1  ;;  %v1339_v33 = vrot.slane %v1338_v20, 4  ;;  %v853_v35 = vpop.f32.mrb[38].mxu0  ;;  %v989_v36 = vpop.f32.mrb[38].mxu1  ;;  %v1517_v37 = vsel %vm1516_vm5, %v1480_v15, %v1515_v63 }
 0x164   : > { %v1218_v38 = vmax.f32 %v1216_v16, %v1217_v26  ;;  %v1221_v39 = vmax.f32 %v1219_v17, %v1220_v28  ;;  %v855_v40 = vpop.f32.mrb[39].mxu0  ;;  %v991_v42 = vpop.f32.mrb[39].mxu1  ;;  %v1151_v44 = vmax.f32 %v1087_v29, 0.0  ;;  %v1054_v45 = vadd.f32 %v2217_v24, %v853_v35 }
 0x165   : > { %v1340_v43 = vmax.f32 %v1338_v20, %v1339_v33  ;;  %v1088_v46 = vadd.f32 %v2217_v24, %v989_v36  ;;  %v1337_v49 = vmax.f32 %v1335_v19, %v1336_v32  ;;  %v1117_v51 = vmax.f32 %v1053_v34, 0.0 }
 0x166   : > { %v1394_v47 = vpack.c.bf16 %v1218_v38, %v1218_v38  ;;  %v1222_v48 = vrot.slane %v1221_v39, 2  ;;  %v1118_v52 = vmax.f32 %v1054_v45, 0.0 }
 0x167   : > { %v1341_v50 = vrot.slane %v1340_v43, 2  ;;  %v1152_v54 = vmax.f32 %v1088_v46, 0.0  ;;  %v1411_v63 = vpack.c.bf16 %v1337_v49, %v1337_v49 }
 0x168   : > { %v1223_v55 = vmax.f32 %v1221_v39, %v1222_v48  ;;  %v1481_v56 = vunpack.c.l.b16 %v1394_v47  ;;  %v1226_v59 = vmax.f32 %v1117_v51, %v1118_v52 }
 0x169   : > { %v1342_v57 = vmax.f32 %v1340_v43, %v1341_v50  ;;  %v1345_v60 = vmax.f32 %v1151_v44, %v1152_v54  ;;  %v858_v61 = vpop.f32.mrb[40].mxu0  ;;  %v994_v62 = vpop.f32.mrb[40].mxu1  ;;  %v1498_v21 = vunpack.c.l.b16 %v1411_v63 }
 0x16a   : > { %v1055_v0 = vadd.f32 %v2212_v22, %v858_v61  ;;  %v1089_v2 = vadd.f32 %v2212_v22, %v994_v62  ;;  %v860_v3 = vpop.f32.mrb[41].mxu0  ;;  %v996_v4 = vpop.f32.mrb[41].mxu1  ;;  %v2291_v5 = vsel %vm1518_vm6, %v1481_v56, %v1517_v37  ;;  %v1227_v7 = vrot.slane %v1226_v59, 4 }
 0x16b   : > { %v1343_v6 = vrot.slane %v1342_v57, 1  ;;  %v1346_v8 = vrot.slane %v1345_v60, 4  ;;  %v861_v9 = vpop.f32.mrb[42].mxu0  ;;  %v997_v10 = vpop.f32.mrb[42].mxu1  ;;  %v1224_v11 = vrot.slane %v1223_v55, 1 }
 0x16c   : > { %v1153_v12 = vmax.f32 %v1089_v2, 0.0  ;;  %v1056_v13 = vadd.f32 %v2217_v24, %v861_v9  ;;  %v863_v14 = vpop.f32.mrb[43].mxu0  ;;  %v999_v15 = vpop.f32.mrb[43].mxu1  ;;  %v1228_v17 = vmax.f32 %v1226_v59, %v1227_v7  ;;  %v1090_v20 = vadd.f32 %v2217_v24, %v997_v10 }
 0x16d   : > { %v1344_v16 = vmax.f32 %v1342_v57, %v1343_v6  ;;  %v1347_v19 = vmax.f32 %v1345_v60, %v1346_v8  ;;  %v1119_v25 = vmax.f32 %v1055_v0, 0.0  ;;  %v1225_v32 = vmax.f32 %v1223_v55, %v1224_v11 }
 0x16e   : > { %v1120_v26 = vmax.f32 %v1056_v13, 0.0  ;;  %v1229_v29 = vrot.slane %v1228_v17, 2  ;;  %v1154_v31 = vmax.f32 %v1090_v20, 0.0 }
 0x16f   : > { %v1412_v28 = vpack.c.bf16 %v1344_v16, %v1344_v16  ;;  %v1348_v30 = vrot.slane %v1347_v19, 2  ;;  %v1395_v52 = vpack.c.bf16 %v1225_v32, %v1225_v32 }
 0x170   : > { %v1233_v33 = vmax.f32 %v1119_v25, %v1120_v26  ;;  %v1230_v35 = vmax.f32 %v1228_v17, %v1229_v29  ;;  %v1352_v37 = vmax.f32 %v1153_v12, %v1154_v31 }
 0x171   : > { %v1499_v34 = vunpack.c.l.b16 %v1412_v28  ;;  %v1349_v36 = vmax.f32 %v1347_v19, %v1348_v30  ;;  %v866_v38 = vpop.f32.mrb[44].mxu0  ;;  %v1002_v39 = vpop.f32.mrb[44].mxu1  ;;  %v1482_v9 = vunpack.c.l.b16 %v1395_v52 }
 0x172   : > { %v1234_v40 = vrot.slane %v1233_v33, 4  ;;  %v1057_v42 = vadd.f32 %v2212_v22, %v866_v38  ;;  %v1091_v43 = vadd.f32 %v2212_v22, %v1002_v39  ;;  %v868_v44 = vpop.f32.mrb[45].mxu0  ;;  %v1004_v45 = vpop.f32.mrb[45].mxu1  ;;  %v1231_v47 = vrot.slane %v1230_v35, 1 }
 0x173   : > { %v1534_v46 = vsel %vm1506_vm0, %v1499_v34, %v1498_v21  ;;  %v1350_v48 = vrot.slane %v1349_v36, 1  ;;  %v1353_v49 = vrot.slane %v1352_v37, 4  ;;  %v869_v50 = vpop.f32.mrb[46].mxu0  ;;  %v1005_v51 = vpop.f32.mrb[46].mxu1 }
 0x174   : > { %v1235_v54 = vmax.f32 %v1233_v33, %v1234_v40  ;;  %v1155_v55 = vmax.f32 %v1091_v43, 0.0  ;;  %v1058_v56 = vadd.f32 %v2217_v24, %v869_v50  ;;  %v871_v57 = vpop.f32.mrb[47].mxu0  ;;  %v1007_v59 = vpop.f32.mrb[47].mxu1  ;;  %v1232_v60 = vmax.f32 %v1230_v35, %v1231_v47 }
 0x175   : > { %v1351_v61 = vmax.f32 %v1349_v36, %v1350_v48  ;;  %v1354_v62 = vmax.f32 %v1352_v37, %v1353_v49  ;;  %v1092_v63 = vadd.f32 %v2217_v24, %v1005_v51  ;;  %v1121_v2 = vmax.f32 %v1057_v42, 0.0 }
 0x176   : > { %v1236_v0 = vrot.slane %v1235_v54, 2  ;;  %v1122_v3 = vmax.f32 %v1058_v56, 0.0  ;;  %v1396_v4 = vpack.c.bf16 %v1232_v60, %v1232_v60 }
 0x177   : > { %v1413_v6 = vpack.c.bf16 %v1351_v61, %v1351_v61  ;;  %v1355_v7 = vrot.slane %v1354_v62, 2  ;;  %v1156_v8 = vmax.f32 %v1092_v63, 0.0 }
 0x178   : > { %v1237_v10 = vmax.f32 %v1235_v54, %v1236_v0  ;;  %v1240_v11 = vmax.f32 %v1121_v2, %v1122_v3  ;;  %v1483_v12 = vunpack.c.l.b16 %v1396_v4 }
 0x179   : > { %v1500_v13 = vunpack.c.l.b16 %v1413_v6  ;;  %v1356_v14 = vmax.f32 %v1354_v62, %v1355_v7  ;;  %v1359_v15 = vmax.f32 %v1155_v55, %v1156_v8  ;;  %v874_v16 = vpop.f32.mrb[48].mxu0  ;;  %v1010_v17 = vpop.f32.mrb[48].mxu1 }
 0x17a   : > { %v1238_v19 = vrot.slane %v1237_v10, 1  ;;  %v1241_v20 = vrot.slane %v1240_v11, 4  ;;  %v1059_v21 = vadd.f32 %v2212_v22, %v874_v16  ;;  %v1093_v25 = vadd.f32 %v2212_v22, %v1010_v17  ;;  %v876_v26 = vpop.f32.mrb[49].mxu0  ;;  %v1012_v28 = vpop.f32.mrb[49].mxu1 }
 0x17b   : > { %v1520_v29 = vsel %vm1506_vm0, %v1483_v12, %v1482_v9  ;;  %v1535_v30 = vsel %vm1508_vm1, %v1500_v13, %v1534_v46  ;;  %v1357_v31 = vrot.slane %v1356_v14, 1  ;;  %v1360_v32 = vrot.slane %v1359_v15, 4  ;;  %v877_v33 = vpop.f32.mrb[50].mxu0  ;;  %v1013_v34 = vpop.f32.mrb[50].mxu1 }
 0x17c   : > { %v1239_v35 = vmax.f32 %v1237_v10, %v1238_v19  ;;  %v1242_v36 = vmax.f32 %v1240_v11, %v1241_v20  ;;  %v1157_v37 = vmax.f32 %v1093_v25, 0.0  ;;  %v879_v38 = vpop.f32.mrb[51].mxu0  ;;  %v1015_v39 = vpop.f32.mrb[51].mxu1  ;;  %v1060_v43 = vadd.f32 %v2217_v24, %v877_v33 }
 0x17d   : > { %v1358_v40 = vmax.f32 %v1356_v14, %v1357_v31  ;;  %v1361_v42 = vmax.f32 %v1359_v15, %v1360_v32  ;;  %v1094_v44 = vadd.f32 %v2217_v24, %v1013_v34  ;;  %v1123_v48 = vmax.f32 %v1059_v21, 0.0 }
 0x17e   : > { %v1397_v45 = vpack.c.bf16 %v1239_v35, %v1239_v35  ;;  %v1243_v47 = vrot.slane %v1242_v36, 2  ;;  %v1124_v50 = vmax.f32 %v1060_v43, 0.0 }
 0x17f   : > { %v1414_v49 = vpack.c.bf16 %v1358_v40, %v1358_v40  ;;  %v1362_v46 = vrot.slane %v1361_v42, 2  ;;  %v1158_v51 = vmax.f32 %v1094_v44, 0.0 }
 0x180   : > { %v1484_v52 = vunpack.c.l.b16 %v1397_v45  ;;  %v1244_v54 = vmax.f32 %v1242_v36, %v1243_v47  ;;  %v1247_v57 = vmax.f32 %v1123_v48, %v1124_v50 }
 0x181   : > { %v1501_v55 = vunpack.c.l.b16 %v1414_v49  ;;  %v1363_v56 = vmax.f32 %v1361_v42, %v1362_v46  ;;  %v1366_v59 = vmax.f32 %v1157_v37, %v1158_v51  ;;  %v882_v60 = vpop.f32.mrb[52].mxu0  ;;  %v1018_v61 = vpop.f32.mrb[52].mxu1 }
 0x182   : > { %v1521_v62 = vsel %vm1508_vm1, %v1484_v52, %v1520_v29  ;;  %v1245_v63 = vrot.slane %v1244_v54, 1  ;;  %v1061_v0 = vadd.f32 %v2212_v22, %v882_v60  ;;  %v1095_v2 = vadd.f32 %v2212_v22, %v1018_v61  ;;  %v884_v3 = vpop.f32.mrb[53].mxu0  ;;  %v1020_v4 = vpop.f32.mrb[53].mxu1 }
 0x183   : > { %v1536_v6 = vsel %vm1510_vm2, %v1501_v55, %v1535_v30  ;;  %v1364_v7 = vrot.slane %v1363_v56, 1  ;;  %v1248_v8 = vrot.slane %v1247_v57, 4  ;;  %v1367_v9 = vrot.slane %v1366_v59, 4  ;;  %v885_v10 = vpop.f32.mrb[54].mxu0  ;;  %v1021_v11 = vpop.f32.mrb[54].mxu1 }
 0x184   : > { %v1246_v12 = vmax.f32 %v1244_v54, %v1245_v63  ;;  %v1159_v13 = vmax.f32 %v1095_v2, 0.0  ;;  %v1062_v14 = vadd.f32 %v2217_v24, %v885_v10  ;;  %v887_v15 = vpop.f32.mrb[55].mxu0  ;;  %v1023_v16 = vpop.f32.mrb[55].mxu1  ;;  %v1096_v21 = vadd.f32 %v2217_v24, %v1021_v11 }
 0x185   : > { %v1365_v17 = vmax.f32 %v1363_v56, %v1364_v7  ;;  %v1249_v19 = vmax.f32 %v1247_v57, %v1248_v8  ;;  %v1368_v20 = vmax.f32 %v1366_v59, %v1367_v9  ;;  %v1125_v26 = vmax.f32 %v1061_v0, 0.0 }
 0x186   : > { %v1398_v25 = vpack.c.bf16 %v1246_v12, %v1246_v12  ;;  %v1126_v28 = vmax.f32 %v1062_v14, 0.0  ;;  %v1160_v32 = vmax.f32 %v1096_v21, 0.0  ;;  %v1283_v55 = vrot.slane %v2223_v41, 4 }
 0x187   : > { %v1415_v29 = vpack.c.bf16 %v1365_v17, %v1365_v17  ;;  %v1250_v30 = vrot.slane %v1249_v19, 2  ;;  %v1369_v31 = vrot.slane %v1368_v20, 2  ;;  %v1290_v12 = vrot.slane %v2232_v1, 4 }
 0x188   : > { %v1485_v33 = vunpack.c.l.b16 %v1398_v25  ;;  %v1254_v34 = vmax.f32 %v1125_v26, %v1126_v28  ;;  %v1373_v38 = vmax.f32 %v1159_v13, %v1160_v32  ;;  %v2320_v11 = vmax.f32 %v2223_v41, %v1283_v55 }
 0x189   : > { %v1502_v35 = vunpack.c.l.b16 %v1415_v29  ;;  %v1251_v36 = vmax.f32 %v1249_v19, %v1250_v30  ;;  %v1370_v37 = vmax.f32 %v1368_v20, %v1369_v31  ;;  %v890_v39 = vpop.f32.mrb[56].mxu0  ;;  %v1026_v40 = vpop.f32.mrb[56].mxu1  ;;  %v1297_v21 = vrot.slane %v2238_v27, 4 }
 0x18a   : > { %v1255_v42 = vrot.slane %v1254_v34, 4  ;;  %v1063_v43 = vadd.f32 %v2212_v22, %v890_v39  ;;  %v1097_v44 = vadd.f32 %v2212_v22, %v1026_v40  ;;  %v892_v45 = vpop.f32.mrb[57].mxu0  ;;  %v1028_v47 = vpop.f32.mrb[57].mxu1  ;;  %v1522_v48 = vsel %vm1510_vm2, %v1485_v33, %v1521_v62 }
 0x18b   : > { %v1537_v49 = vsel %vm1512_vm3, %v1502_v35, %v1536_v6  ;;  %v1252_v46 = vrot.slane %v1251_v36, 1  ;;  %v1371_v50 = vrot.slane %v1370_v37, 1  ;;  %v1374_v51 = vrot.slane %v1373_v38, 4  ;;  %v893_v52 = vpop.f32.mrb[58].mxu0  ;;  %v1029_v54 = vpop.f32.mrb[58].mxu1 }
 0x18c   : > { %v1256_v56 = vmax.f32 %v1254_v34, %v1255_v42  ;;  %v1161_v57 = vmax.f32 %v1097_v44, 0.0  ;;  %v1064_v59 = vadd.f32 %v2217_v24, %v893_v52  ;;  %v895_v60 = vpop.f32.mrb[59].mxu0  ;;  %v1031_v61 = vpop.f32.mrb[59].mxu1  ;;  %v1098_v62 = vadd.f32 %v2217_v24, %v1029_v54 }
 0x18d   : > { %v1253_v63 = vmax.f32 %v1251_v36, %v1252_v46  ;;  %v1372_v0 = vmax.f32 %v1370_v37, %v1371_v50  ;;  %v1375_v2 = vmax.f32 %v1373_v38, %v1374_v51  ;;  %v1127_v4 = vmax.f32 %v1063_v43, 0.0 }
 0x18e   : > { %v1257_v3 = vrot.slane %v1256_v56, 2  ;;  %v1128_v6 = vmax.f32 %v1064_v59, 0.0  ;;  %v1162_v10 = vmax.f32 %v1098_v62, 0.0  ;;  %v1285_v38 = vrot.slane %v2320_v11, 2 }
 0x18f   : > { %v1399_v7 = vpack.c.bf16 %v1253_v63, %v1253_v63  ;;  %v1416_v8 = vpack.c.bf16 %v1372_v0, %v1372_v0  ;;  %v1376_v9 = vrot.slane %v1375_v2, 2  ;;  %v1291_v39 = vmax.f32 %v2232_v1, %v1290_v12 }
 0x190   : > { %v1258_v13 = vmax.f32 %v1256_v56, %v1257_v3  ;;  %v1261_v14 = vmax.f32 %v1127_v4, %v1128_v6  ;;  %v1380_v19 = vmax.f32 %v1161_v57, %v1162_v10  ;;  %v1298_v46 = vmax.f32 %v2238_v27, %v1297_v21  ;;  %v1995_v10 = vld [vmem:[%s2370_s2 + $0x8] sm:$0xff] }
 0x191   : > { %v1486_v15 = vunpack.c.l.b16 %v1399_v7  ;;  %v1503_v16 = vunpack.c.l.b16 %v1416_v8  ;;  %v1377_v17 = vmax.f32 %v1375_v2, %v1376_v9  ;;  %v898_v20 = vpop.f32.mrb[60].mxu0  ;;  %v1311_v51 = vrot.slane %v2257_v23, 4 }
 0x192   : > { %v1259_v25 = vrot.slane %v1258_v13, 1  ;;  %v1262_v26 = vrot.slane %v1261_v14, 4  ;;  %v1065_v28 = vadd.f32 %v2212_v22, %v898_v20  ;;  %v900_v29 = vpop.f32.mrb[61].mxu0  ;;  %v1381_v31 = vrot.slane %v1380_v19, 4 }
 0x193   : > { %v1378_v30 = vrot.slane %v1377_v17, 1  ;;  %v901_v41 = vpop.f32.mrb[62].mxu0  ;;  %v1523_v32 = vsel %vm1512_vm3, %v1486_v15, %v1522_v48  ;;  %v1538_v33 = vsel %vm1514_vm4, %v1503_v16, %v1537_v49  ;;  %v1304_v48 = vrot.slane %v2250_v58, 4 }
 0x194   : > { %v1260_v34 = vmax.f32 %v1258_v13, %v1259_v25  ;;  %v1263_v35 = vmax.f32 %v1261_v14, %v1262_v26  ;;  %v1066_v36 = vadd.f32 %v2217_v24, %v901_v41  ;;  %v903_v37 = vpop.f32.mrb[63].mxu0  ;;  %v1382_v42 = vmax.f32 %v1380_v19, %v1381_v31 }
 0x195   : > { %v1379_v40 = vmax.f32 %v1377_v17, %v1378_v30  ;;  %v1129_v45 = vmax.f32 %v1065_v28, 0.0  ;;  %v1318_v55 = vrot.slane %v2264_v53, 4  ;;  %v1325_v1 = vrot.slane %v2271_v18, 4 }
 0x196   : > { %v1400_v43 = vpack.c.bf16 %v1260_v34, %v1260_v34  ;;  %v1264_v44 = vrot.slane %v1263_v35, 2  ;;  %v1130_v47 = vmax.f32 %v1066_v36, 0.0  ;;  %v1383_v50 = vrot.slane %v1382_v42, 2 }
 0x197   : > { %v1417_v49 = vpack.c.bf16 %v1379_v40, %v1379_v40  ;;  %v1292_v2 = vrot.slane %v1291_v39, 2  ;;  %v1305_v62 = vmax.f32 %v2250_v58, %v1304_v48  ;;  %v1312_v7 = vmax.f32 %v2257_v23, %v1311_v51 }
 0x198   : > { %v1487_v24 = vunpack.c.l.b16 %v1400_v43  ;;  %v1265_v52 = vmax.f32 %v1263_v35, %v1264_v44  ;;  %v1268_v54 = vmax.f32 %v1129_v45, %v1130_v47  ;;  %v1384_v57 = vmax.f32 %v1382_v42, %v1383_v50 }
 0x199   : > { %v1504_v56 = vunpack.c.l.b16 %v1417_v49  ;;  %v906_v59 = vpop.f32.mrb[64].mxu0  ;;  %v1299_v13 = vrot.slane %v1298_v46, 2  ;;  %v1319_v14 = vmax.f32 %v2264_v53, %v1318_v55  ;;  %v1326_v15 = vmax.f32 %v2271_v18, %v1325_v1 }
 0x19a   : > { %v1266_v60 = vrot.slane %v1265_v52, 1  ;;  %v1269_v61 = vrot.slane %v1268_v54, 4  ;;  %v1067_v27 = vadd.f32 %v2212_v22, %v906_v59  ;;  %v908_v63 = vpop.f32.mrb[65].mxu0  ;;  %v1524_v0 = vsel %vm1514_vm4, %v1487_v24, %v1523_v32 }
 0x19b   : > { %v1385_v3 = vrot.slane %v1384_v57, 1  ;;  %v909_v4 = vpop.f32.mrb[66].mxu0  ;;  %v1539_v6 = vsel %vm1516_vm5, %v1504_v56, %v1538_v33  ;;  %v1286_v23 = vmax.f32 %v2320_v11, %v1285_v38  ;;  %v1306_v21 = vrot.slane %v1305_v62, 2 }
 0x19c   : > { %v1267_v8 = vmax.f32 %v1265_v52, %v1266_v60  ;;  %v1270_v9 = vmax.f32 %v1268_v54, %v1269_v61  ;;  %v1068_v12 = vadd.f32 %v1995_v10, %v909_v4  ;;  %v911_v22 = vpop.f32.mrb[67].mxu0  ;;  %v1131_v19 = vmax.f32 %v1067_v27, 0.0 }
 0x19d   : > { %v1386_v58 = vmax.f32 %v1384_v57, %v1385_v3  ;;  %v1313_v26 = vrot.slane %v1312_v7, 2  ;;  %v1293_v31 = vmax.f32 %v1291_v39, %v1292_v2  ;;  %v1300_v41 = vmax.f32 %v1298_v46, %v1299_v13 }
 0x19e   : > { %v1401_v16 = vpack.c.bf16 %v1267_v8, %v1267_v8  ;;  %v1271_v17 = vrot.slane %v1270_v9, 2  ;;  %v1132_v20 = vmax.f32 %v1068_v12, 0.0  ;;  %v1320_v32 = vrot.slane %v1319_v14, 2 }
 0x19f   : > { %v1418_v25 = vpack.c.bf16 %v1386_v58, %v1386_v58  ;;  %v1327_v53 = vrot.slane %v1326_v15, 2  ;;  %v1307_v36 = vmax.f32 %v1305_v62, %v1306_v21  ;;  %v1287_v40 = vrot.slane %v1286_v23, 1 }
 0x1a0   : > { %v1488_v28 = vunpack.c.l.b16 %v1401_v16  ;;  %v1272_v29 = vmax.f32 %v1270_v9, %v1271_v17  ;;  %v1275_v30 = vmax.f32 %v1131_v19, %v1132_v20  ;;  %v1314_v11 = vmax.f32 %v1312_v7, %v1313_v26 }
 0x1a1   : > { %v1505_v33 = vunpack.c.l.b16 %v1418_v25  ;;  %v1294_v43 = vrot.slane %v1293_v31, 1  ;;  %v1321_v44 = vmax.f32 %v1319_v14, %v1320_v32  ;;  %v1301_v45 = vrot.slane %v1300_v41, 1 }
 0x1a2   : > { %v1273_v34 = vrot.slane %v1272_v29, 1  ;;  %v1276_v18 = vrot.slane %v1275_v30, 4  ;;  %v1525_v35 = vsel %vm1516_vm5, %v1488_v28, %v1524_v0  ;;  %v1328_v47 = vmax.f32 %v1326_v15, %v1327_v53  ;;  %v1792_v28 = vld [vmem:[%s2372_s4] ss:$0 sm:$0xff] }
 0x1a3   : > { %v1540_v37 = vsel %vm1518_vm6, %v1505_v33, %v1539_v6  ;;  %v1308_v48 = vrot.slane %v1307_v36, 1  ;;  %v1288_v49 = vmax.f32 %v1286_v23, %v1287_v40  ;;  %v1315_v50 = vrot.slane %v1314_v11, 1 }
 0x1a4   : > { %v1274_v38 = vmax.f32 %v1272_v29, %v1273_v34  ;;  %v1277_v42 = vmax.f32 %v1275_v30, %v1276_v18  ;;  %v1295_v52 = vmax.f32 %v1293_v31, %v1294_v43  ;;  %v1322_v54 = vrot.slane %v1321_v44, 1 }
 0x1a5   : > { %v1302_v55 = vmax.f32 %v1300_v41, %v1301_v45  ;;  %v1329_v1 = vrot.slane %v1328_v47, 1  ;;  %v1309_v59 = vmax.f32 %v1307_v36, %v1308_v48  ;;  %v1404_v61 = vpack.c.bf16 %v1288_v49, %v1288_v49 }
 0x1a6   : > { %v1402_v39 = vpack.c.bf16 %v1274_v38, %v1274_v38  ;;  %v1278_v46 = vrot.slane %v1277_v42, 2  ;;  %v1316_v27 = vmax.f32 %v1314_v11, %v1315_v50  ;;  %v1405_v0 = vpack.c.bf16 %v1295_v52, %v1295_v52 }
 0x1a7   : > { %v1323_v2 = vmax.f32 %v1321_v44, %v1322_v54  ;;  %v1406_v62 = vpack.c.bf16 %v1302_v55, %v1302_v55  ;;  %v1330_v3 = vmax.f32 %v1328_v47, %v1329_v1  ;;  %v1407_v6 = vpack.c.bf16 %v1309_v59, %v1309_v59 }
 0x1a8   : > { %v1279_v51 = vmax.f32 %v1277_v42, %v1278_v46  ;;  %v1489_v24 = vunpack.c.l.b16 %v1402_v39  ;;  %v1491_v7 = vunpack.c.l.b16 %v1404_v61  ;;  %v1408_v8 = vpack.c.bf16 %v1316_v27, %v1316_v27 }
 0x1a9   : > { %v1492_v10 = vunpack.c.l.b16 %v1405_v0  ;;  %v1409_v12 = vpack.c.bf16 %v1323_v2, %v1323_v2  ;;  %v1493_v22 = vunpack.c.l.b16 %v1406_v62  ;;  %v1410_v13 = vpack.c.bf16 %v1330_v3, %v1330_v3 }
 0x1aa   : > { %v1280_v56 = vrot.slane %v1279_v51, 1  ;;  %v1526_v57 = vsel %vm1518_vm6, %v1489_v24, %v1525_v35  ;;  %v1494_v14 = vunpack.c.l.b16 %v1407_v6  ;;  %v1495_v58 = vunpack.c.l.b16 %v1408_v8 }
 0x1ab   : > { %v1541_v60 = vpack.c.b16 %v1526_v57, %v2291_v5  ;;  %v1496_v17 = vunpack.c.l.b16 %v1409_v12  ;;  %v1497_v20 = vunpack.c.l.b16 %v1410_v13 }
 0x1ac   : > { %v1281_v63 = vmax.f32 %v1279_v51, %v1280_v56 }
 0x1ad   : > { %1830 = vmatprep.mubr.bf16.mxu1 %v1541_v60 }
 0x1ae   : > { %v1403_v4 = vpack.c.bf16 %v1281_v63, %v1281_v63 }
 0x1b0   : > { %v1490_v9 = vunpack.c.l.b16 %v1403_v4 }
 0x1b2   : > { %v1527_v5 = vsel %vm1506_vm0, %v1491_v7, %v1490_v9 }
 0x1b3   : > { %v1528_v15 = vsel %vm1508_vm1, %v1492_v10, %v1527_v5 }
 0x1b4   : > { %v1529_v16 = vsel %vm1510_vm2, %v1493_v22, %v1528_v15 }
 0x1b5   : > { %v1530_v19 = vsel %vm1512_vm3, %v1494_v14, %v1529_v16 }
 0x1b6   : > { %v1531_v23 = vsel %vm1514_vm4, %v1495_v58, %v1530_v19 }
 0x1b7   : > { %v1532_v21 = vsel %vm1516_vm5, %v1496_v17, %v1531_v23 }
 0x1b8   : > { %v1533_v25 = vsel %vm1518_vm6, %v1497_v20, %v1532_v21 }
 0x1b9   : > { %v1542_v26 = vpack.c.b16 %v1540_v37, %v1533_v25 }
 0x1bb   : > { %1831 = vmatmul.mubr.bf16.vlgmr.msra.gmra.mrb[60].mxu1 %v1542_v26 }
 0x28e   : > { %v1832_v29 = vpop.f32.mrb[60].mxu1 }
 0x28f   : > { %v1627_v30 = vpop.f32.mrb[61].mxu1  ;;  %v1636_v53 = vadd.f32 %v1832_v29, %v1792_v28 }
 0x290   : > { %v1628_v31 = vadd.f32 %v1792_v28, %v1627_v30  ;;  %v1833_v41 = vpop.f32.mrb[62].mxu1 }
 0x291   : > { %v1630_v32 = vpop.f32.mrb[63].mxu1  ;;  %v1639_v34 = vadd.f32 %v1833_v41, %v1792_v28  ;;  %1644 = vst [vmem:[%s229_s15 + $0x10] sm:$0xff] %v1636_v53 }
 0x292   : > { %1642 = vst [vmem:[%s229_s15] sm:$0xff] %v1628_v31  ;;  %v1631_v33 = vadd.f32 %v1792_v28, %v1630_v32 }
 0x293   : > { %1645 = vst [vmem:[%s229_s15 + $0x18] sm:$0xff] %v1639_v34 }
 0x294   : > { %1643 = vst [vmem:[%s229_s15 + $0x8] sm:$0xff] %v1631_v33 }
 0x295 PF: > { %s15_s18 = sadd.s32 1, %s2002_s18  }
 0x296   : > { %p12_p5 = scmp.ge.s32.totalorder %s15_s18, 4  }
 0x298   :  { %14 = sbr.rel (!%p12_p5) target bundleno = 1 (0x1), region = 70 }

</bundles_post_ra>
